<compile_context>
chip_gen: v6e
topology: v6e:2x2x1
jax: 0.10.0
libtpu: 0.0.40
codegen_flags: <defaults>
</compile_context>

<pallas_src>
import functools

import jax
import jax.numpy as jnp
from jax.experimental import pallas as pl
from jax.experimental.pallas import tpu as pltpu


def _conv3x3_sigmoid_kernel(x_ref, w_ref, b_ref, o_ref, xp_ref, *,
                            H, W, Wp, pad, cin, ksize):
    """One image: o = sigmoid(conv3x3(x) + b); pad / im2col / un-pad all in-kernel.

    x_ref : (1, Cin, H*W)         unpadded image, row-major flattened (free reshape)
    w_ref : (Cout, K2*Cin_p)      tap-major packed weights, Cin zero-padded to Cin_p
    b_ref : (Cout, 1)
    o_ref : (1, Cout, H*W)        dense output (free reshape to NCHW outside)
    xp_ref: (Cin_p, L)  scratch   flattened zero-padded image
    """
    HWp = H * Wp

    # ---- build the zero-padded flat image in VMEM (no wrapper-side pad pass) ----
    xp_ref[...] = jnp.zeros_like(xp_ref)
    xin = x_ref[0]                                    # (Cin, H*W), single load
    for h in range(H):
        off = (h + pad) * Wp + pad                    # static lane offset
        xp_ref[pl.ds(0, cin), pl.ds(off, W)] = xin[:, h * W:(h + 1) * W]

    xp = xp_ref[...]                                  # (Cin_p, L)

    # ---- in-register im2col: stack the K2 lane-shifted tap views along K ----
    cols = jnp.concatenate(
        [xp[:, kh * Wp + kw: kh * Wp + kw + HWp]
         for kh in range(ksize) for kw in range(ksize)],
        axis=0)                                       # (K2*Cin_p, HWp)

    # ---- one fused MXU matmul, f32 accumulation, bias added once ----
    acc = jnp.dot(w_ref[...], cols, preferred_element_type=jnp.float32)
    acc = acc + b_ref[...]                            # (Cout, 1) broadcast over lanes

    # sigmoid: exp on the EUP; exact reciprocal keeps us within the 1e-4 tolerance
    y = pl.reciprocal(1.0 + jnp.exp(-acc), approx=False)

    # ---- drop padded-width columns in-register -> one lane-dense (H*W) store ----
    dense = jnp.concatenate([y[:, h * Wp: h * Wp + W] for h in range(H)], axis=1)
    o_ref[0] = dense.astype(o_ref.dtype)


def basic_block_sig_forward(x_nchw, w_oihw, bias, *, pad=1):
    """BasicBlockSig: sigmoid(Conv2d(x, 3x3, stride=1, padding=pad)).  NCHW in/out."""
    N, Cin, H, W = x_nchw.shape
    Cout, _, KH, KW = w_oihw.shape
    assert KH == KW, "square kernel expected"
    ksize = KH
    Wp = W + 2 * pad
    HW = H * W
    HWp = H * Wp
    # Flat padded length: largest tap window must fit, as must the row fills.
    L = (ksize - 1) * (Wp + 1) + HWp
    L = max(L, (H + 2 * pad) * Wp)
    cin_p = -(-Cin // 8) * 8                          # pad contraction to sublane tiles

    # Free row-major reshape (no HBM copy); padding / un-padding happen in-kernel.
    x_flat = x_nchw.reshape(N, Cin, HW)

    # Pack weights tap-major with zero-padded Cin: k = (kh*KW + kw)*cin_p + ci.
    w_t = jnp.transpose(w_oihw, (0, 2, 3, 1))         # (Cout, KH, KW, Cin)
    w_t = jnp.pad(w_t, ((0, 0), (0, 0), (0, 0), (0, cin_p - Cin)))
    w_packed = w_t.reshape(Cout, ksize * ksize * cin_p)
    b2d = bias.reshape(Cout, 1)

    kernel = functools.partial(_conv3x3_sigmoid_kernel, H=H, W=W, Wp=Wp,
                               pad=pad, cin=Cin, ksize=ksize)
    out_flat = pl.pallas_call(
        kernel,
        out_shape=jax.ShapeDtypeStruct((N, Cout, HW), x_nchw.dtype),
        grid=(N,),
        in_specs=[
            pl.BlockSpec((1, Cin, HW), lambda n: (n, 0, 0)),
            pl.BlockSpec((Cout, ksize * ksize * cin_p), lambda n: (0, 0)),
            pl.BlockSpec((Cout, 1), lambda n: (0, 0)),
        ],
        out_specs=pl.BlockSpec((1, Cout, HW), lambda n: (n, 0, 0)),
        scratch_shapes=[pltpu.VMEM((cin_p, L), x_nchw.dtype)],
        compiler_params=pltpu.CompilerParams(
            dimension_semantics=("parallel",)),
    )(x_flat, w_packed, b2d)

    # Output is already dense; reshape is a free row-major view.
    return out_flat.reshape(N, Cout, H, W)


# ----------------------------- reference (pure JAX) -----------------------------

def basic_block_sig_reference(x_nchw, w_oihw, bias, *, pad=1):
    y = jax.lax.conv_general_dilated(
        x_nchw, w_oihw, window_strides=(1, 1),
        padding=[(pad, pad), (pad, pad)],
        dimension_numbers=("NCHW", "OIHW", "NCHW"))
    y = y + bias[None, :, None, None]
    return jax.nn.sigmoid(y)


# --------------------------------------- main ---------------------------------------

if __name__ == "__main__":
    key = jax.random.PRNGKey(0)
    N, Cin, Cout, H, W = 2, 4, 4, 16, 16

    k_x, k_w, k_b = jax.random.split(key, 3)
    x = jax.random.normal(k_x, (N, Cin, H, W), dtype=jnp.float32)

    # Deterministic xavier-ish init, PyTorch OIHW layout.
    fan = Cin * 9 + Cout * 9
    w = jax.random.normal(k_w, (Cout, Cin, 3, 3), dtype=jnp.float32) * (2.0 / fan) ** 0.5
    b = jax.random.normal(k_b, (Cout,), dtype=jnp.float32) * 0.05

    out = jax.jit(basic_block_sig_forward)(x, w, b)
    out = jax.block_until_ready(out)

    ref = basic_block_sig_reference(x, w, b)
    assert out.shape == (N, Cout, H, W)
    max_diff = jnp.max(jnp.abs(out - ref))
    assert jnp.allclose(out, ref, atol=1e-4, rtol=1e-4), f"max abs diff {max_diff}"

    print("KERNEL_OK")
</pallas_src>

<mosaic_0001>
module attributes {stable_mosaic.version = 11 : i64} {
  func.func @_conv3x3_sigmoid_kernel(%arg0: i32, %arg1: memref<1x4x256xf32, #tpu.memory_space<vmem>>, %arg2: memref<4x72xf32, #tpu.memory_space<vmem>>, %arg3: memref<4x1xf32, #tpu.memory_space<vmem>>, %arg4: memref<1x4x256xf32, #tpu.memory_space<vmem>>, %arg5: memref<8x326xf32, #tpu.memory_space<vmem>>) attributes {dimension_semantics = [#tpu.dimension_semantics<parallel>], iteration_bounds = array<i64: 2>, scalar_prefetch = 0 : i64, scratch_operands = 1 : i64, tpu.core_type = #tpu.core_type<tc>, window_params = [{transform_indices = @transform_0, window_bounds = array<i64: 1, 4, 256>}, {pipeline_mode = #tpu.pipeline_mode<synchronous>, transform_indices = @transform_1, window_bounds = array<i64: 4, 72>}, {pipeline_mode = #tpu.pipeline_mode<synchronous>, transform_indices = @transform_2, window_bounds = array<i64: 4, 1>}, {transform_indices = @transform_3, window_bounds = array<i64: 1, 4, 256>}]} {
    %cst = arith.constant 0.000000e+00 : f32
    %0 = vector.broadcast %cst : f32 to vector<8x326xf32>
    %c0 = arith.constant 0 : index
    %c0_0 = arith.constant 0 : index
    %1 = vector.load %arg5[%c0, %c0_0] : memref<8x326xf32, #tpu.memory_space<vmem>>, vector<8x326xf32>
    tpu.vector_store %arg5[%c0, %c0_0], %0 {strides = array<i32>} : memref<8x326xf32, #tpu.memory_space<vmem>>, vector<8x326xf32>,
    %c0_1 = arith.constant 0 : index
    %c0_2 = arith.constant 0 : index
    %c0_3 = arith.constant 0 : index
    %2 = vector.load %arg1[%c0_1, %c0_2, %c0_3] : memref<1x4x256xf32, #tpu.memory_space<vmem>>, vector<1x4x256xf32>
    %3 = vector.shape_cast %2 : vector<1x4x256xf32> to vector<4x256xf32>
    %4 = vector.extract_strided_slice %3 {offsets = [0, 0], sizes = [4, 16], strides = [1, 1]} : vector<4x256xf32> to vector<4x16xf32>
    %c0_4 = arith.constant 0 : index
    %c19 = arith.constant 19 : index
    %5 = vector.load %arg5[%c0_4, %c19] : memref<8x326xf32, #tpu.memory_space<vmem>>, vector<4x16xf32>
    tpu.vector_store %arg5[%c0_4, %c19], %4 {strides = array<i32>} : memref<8x326xf32, #tpu.memory_space<vmem>>, vector<4x16xf32>,
    %6 = vector.extract_strided_slice %3 {offsets = [0, 16], sizes = [4, 16], strides = [1, 1]} : vector<4x256xf32> to vector<4x16xf32>
    %c0_5 = arith.constant 0 : index
    %c37 = arith.constant 37 : index
    %7 = vector.load %arg5[%c0_5, %c37] : memref<8x326xf32, #tpu.memory_space<vmem>>, vector<4x16xf32>
    tpu.vector_store %arg5[%c0_5, %c37], %6 {strides = array<i32>} : memref<8x326xf32, #tpu.memory_space<vmem>>, vector<4x16xf32>,
    %8 = vector.extract_strided_slice %3 {offsets = [0, 32], sizes = [4, 16], strides = [1, 1]} : vector<4x256xf32> to vector<4x16xf32>
    %c0_6 = arith.constant 0 : index
    %c55 = arith.constant 55 : index
    %9 = vector.load %arg5[%c0_6, %c55] : memref<8x326xf32, #tpu.memory_space<vmem>>, vector<4x16xf32>
    tpu.vector_store %arg5[%c0_6, %c55], %8 {strides = array<i32>} : memref<8x326xf32, #tpu.memory_space<vmem>>, vector<4x16xf32>,
    %10 = vector.extract_strided_slice %3 {offsets = [0, 48], sizes = [4, 16], strides = [1, 1]} : vector<4x256xf32> to vector<4x16xf32>
    %c0_7 = arith.constant 0 : index
    %c73 = arith.constant 73 : index
    %11 = vector.load %arg5[%c0_7, %c73] : memref<8x326xf32, #tpu.memory_space<vmem>>, vector<4x16xf32>
    tpu.vector_store %arg5[%c0_7, %c73], %10 {strides = array<i32>} : memref<8x326xf32, #tpu.memory_space<vmem>>, vector<4x16xf32>,
    %12 = vector.extract_strided_slice %3 {offsets = [0, 64], sizes = [4, 16], strides = [1, 1]} : vector<4x256xf32> to vector<4x16xf32>
    %c0_8 = arith.constant 0 : index
    %c91 = arith.constant 91 : index
    %13 = vector.load %arg5[%c0_8, %c91] : memref<8x326xf32, #tpu.memory_space<vmem>>, vector<4x16xf32>
    tpu.vector_store %arg5[%c0_8, %c91], %12 {strides = array<i32>} : memref<8x326xf32, #tpu.memory_space<vmem>>, vector<4x16xf32>,
    %14 = vector.extract_strided_slice %3 {offsets = [0, 80], sizes = [4, 16], strides = [1, 1]} : vector<4x256xf32> to vector<4x16xf32>
    %c0_9 = arith.constant 0 : index
    %c109 = arith.constant 109 : index
    %15 = vector.load %arg5[%c0_9, %c109] : memref<8x326xf32, #tpu.memory_space<vmem>>, vector<4x16xf32>
    tpu.vector_store %arg5[%c0_9, %c109], %14 {strides = array<i32>} : memref<8x326xf32, #tpu.memory_space<vmem>>, vector<4x16xf32>,
    %16 = vector.extract_strided_slice %3 {offsets = [0, 96], sizes = [4, 16], strides = [1, 1]} : vector<4x256xf32> to vector<4x16xf32>
    %c0_10 = arith.constant 0 : index
    %c127 = arith.constant 127 : index
    %17 = vector.load %arg5[%c0_10, %c127] : memref<8x326xf32, #tpu.memory_space<vmem>>, vector<4x16xf32>
    tpu.vector_store %arg5[%c0_10, %c127], %16 {strides = array<i32>} : memref<8x326xf32, #tpu.memory_space<vmem>>, vector<4x16xf32>,
    %18 = vector.extract_strided_slice %3 {offsets = [0, 112], sizes = [4, 16], strides = [1, 1]} : vector<4x256xf32> to vector<4x16xf32>
    %c0_11 = arith.constant 0 : index
    %c145 = arith.constant 145 : index
    %19 = vector.load %arg5[%c0_11, %c145] : memref<8x326xf32, #tpu.memory_space<vmem>>, vector<4x16xf32>
    tpu.vector_store %arg5[%c0_11, %c145], %18 {strides = array<i32>} : memref<8x326xf32, #tpu.memory_space<vmem>>, vector<4x16xf32>,
    %20 = vector.extract_strided_slice %3 {offsets = [0, 128], sizes = [4, 16], strides = [1, 1]} : vector<4x256xf32> to vector<4x16xf32>
    %c0_12 = arith.constant 0 : index
    %c163 = arith.constant 163 : index
    %21 = vector.load %arg5[%c0_12, %c163] : memref<8x326xf32, #tpu.memory_space<vmem>>, vector<4x16xf32>
    tpu.vector_store %arg5[%c0_12, %c163], %20 {strides = array<i32>} : memref<8x326xf32, #tpu.memory_space<vmem>>, vector<4x16xf32>,
    %22 = vector.extract_strided_slice %3 {offsets = [0, 144], sizes = [4, 16], strides = [1, 1]} : vector<4x256xf32> to vector<4x16xf32>
    %c0_13 = arith.constant 0 : index
    %c181 = arith.constant 181 : index
    %23 = vector.load %arg5[%c0_13, %c181] : memref<8x326xf32, #tpu.memory_space<vmem>>, vector<4x16xf32>
    tpu.vector_store %arg5[%c0_13, %c181], %22 {strides = array<i32>} : memref<8x326xf32, #tpu.memory_space<vmem>>, vector<4x16xf32>,
    %24 = vector.extract_strided_slice %3 {offsets = [0, 160], sizes = [4, 16], strides = [1, 1]} : vector<4x256xf32> to vector<4x16xf32>
    %c0_14 = arith.constant 0 : index
    %c199 = arith.constant 199 : index
    %25 = vector.load %arg5[%c0_14, %c199] : memref<8x326xf32, #tpu.memory_space<vmem>>, vector<4x16xf32>
    tpu.vector_store %arg5[%c0_14, %c199], %24 {strides = array<i32>} : memref<8x326xf32, #tpu.memory_space<vmem>>, vector<4x16xf32>,
    %26 = vector.extract_strided_slice %3 {offsets = [0, 176], sizes = [4, 16], strides = [1, 1]} : vector<4x256xf32> to vector<4x16xf32>
    %c0_15 = arith.constant 0 : index
    %c217 = arith.constant 217 : index
    %27 = vector.load %arg5[%c0_15, %c217] : memref<8x326xf32, #tpu.memory_space<vmem>>, vector<4x16xf32>
    tpu.vector_store %arg5[%c0_15, %c217], %26 {strides = array<i32>} : memref<8x326xf32, #tpu.memory_space<vmem>>, vector<4x16xf32>,
    %28 = vector.extract_strided_slice %3 {offsets = [0, 192], sizes = [4, 16], strides = [1, 1]} : vector<4x256xf32> to vector<4x16xf32>
    %c0_16 = arith.constant 0 : index
    %c235 = arith.constant 235 : index
    %29 = vector.load %arg5[%c0_16, %c235] : memref<8x326xf32, #tpu.memory_space<vmem>>, vector<4x16xf32>
    tpu.vector_store %arg5[%c0_16, %c235], %28 {strides = array<i32>} : memref<8x326xf32, #tpu.memory_space<vmem>>, vector<4x16xf32>,
    %30 = vector.extract_strided_slice %3 {offsets = [0, 208], sizes = [4, 16], strides = [1, 1]} : vector<4x256xf32> to vector<4x16xf32>
    %c0_17 = arith.constant 0 : index
    %c253 = arith.constant 253 : index
    %31 = vector.load %arg5[%c0_17, %c253] : memref<8x326xf32, #tpu.memory_space<vmem>>, vector<4x16xf32>
    tpu.vector_store %arg5[%c0_17, %c253], %30 {strides = array<i32>} : memref<8x326xf32, #tpu.memory_space<vmem>>, vector<4x16xf32>,
    %32 = vector.extract_strided_slice %3 {offsets = [0, 224], sizes = [4, 16], strides = [1, 1]} : vector<4x256xf32> to vector<4x16xf32>
    %c0_18 = arith.constant 0 : index
    %c271 = arith.constant 271 : index
    %33 = vector.load %arg5[%c0_18, %c271] : memref<8x326xf32, #tpu.memory_space<vmem>>, vector<4x16xf32>
    tpu.vector_store %arg5[%c0_18, %c271], %32 {strides = array<i32>} : memref<8x326xf32, #tpu.memory_space<vmem>>, vector<4x16xf32>,
    %34 = vector.extract_strided_slice %3 {offsets = [0, 240], sizes = [4, 16], strides = [1, 1]} : vector<4x256xf32> to vector<4x16xf32>
    %c0_19 = arith.constant 0 : index
    %c289 = arith.constant 289 : index
    %35 = vector.load %arg5[%c0_19, %c289] : memref<8x326xf32, #tpu.memory_space<vmem>>, vector<4x16xf32>
    tpu.vector_store %arg5[%c0_19, %c289], %34 {strides = array<i32>} : memref<8x326xf32, #tpu.memory_space<vmem>>, vector<4x16xf32>,
    %c0_20 = arith.constant 0 : index
    %c0_21 = arith.constant 0 : index
    %36 = vector.load %arg5[%c0_20, %c0_21] : memref<8x326xf32, #tpu.memory_space<vmem>>, vector<8x326xf32>
    %37 = vector.extract_strided_slice %36 {offsets = [0, 0], sizes = [8, 288], strides = [1, 1]} : vector<8x326xf32> to vector<8x288xf32>
    %38 = vector.extract_strided_slice %36 {offsets = [0, 1], sizes = [8, 288], strides = [1, 1]} : vector<8x326xf32> to vector<8x288xf32>
    %39 = vector.extract_strided_slice %36 {offsets = [0, 2], sizes = [8, 288], strides = [1, 1]} : vector<8x326xf32> to vector<8x288xf32>
    %40 = vector.extract_strided_slice %36 {offsets = [0, 18], sizes = [8, 288], strides = [1, 1]} : vector<8x326xf32> to vector<8x288xf32>
    %41 = vector.extract_strided_slice %36 {offsets = [0, 19], sizes = [8, 288], strides = [1, 1]} : vector<8x326xf32> to vector<8x288xf32>
    %42 = vector.extract_strided_slice %36 {offsets = [0, 20], sizes = [8, 288], strides = [1, 1]} : vector<8x326xf32> to vector<8x288xf32>
    %43 = vector.extract_strided_slice %36 {offsets = [0, 36], sizes = [8, 288], strides = [1, 1]} : vector<8x326xf32> to vector<8x288xf32>
    %44 = vector.extract_strided_slice %36 {offsets = [0, 37], sizes = [8, 288], strides = [1, 1]} : vector<8x326xf32> to vector<8x288xf32>
    %45 = vector.extract_strided_slice %36 {offsets = [0, 38], sizes = [8, 288], strides = [1, 1]} : vector<8x326xf32> to vector<8x288xf32>
    %46 = tpu.concatenate %37, %38, %39, %40, %41, %42, %43, %44, %45 in 0 : vector<8x288xf32>, vector<8x288xf32>, vector<8x288xf32>, vector<8x288xf32>, vector<8x288xf32>, vector<8x288xf32>, vector<8x288xf32>, vector<8x288xf32>, vector<8x288xf32> -> vector<72x288xf32>
    %c0_22 = arith.constant 0 : index
    %c0_23 = arith.constant 0 : index
    %47 = vector.load %arg2[%c0_22, %c0_23] : memref<4x72xf32, #tpu.memory_space<vmem>>, vector<4x72xf32>
    %cst_24 = arith.constant dense<0.000000e+00> : vector<4x288xf32>
    %48 = tpu.matmul %47, %46, %cst_24 {dimension_numbers = #tpu.dot_dimension_numbers<[1], [0], [0], [1], [0, 0, 1, 1], [], []>} : vector<4x72xf32>, vector<72x288xf32>, vector<4x288xf32> -> vector<4x288xf32>
    %c0_25 = arith.constant 0 : index
    %c0_26 = arith.constant 0 : index
    %49 = vector.load %arg3[%c0_25, %c0_26] : memref<4x1xf32, #tpu.memory_space<vmem>>, vector<4x1xf32>
    %50 = vector.broadcast %49 : vector<4x1xf32> to vector<4x288xf32>
    %51 = arith.addf %48, %50 : vector<4x288xf32>
    %cst_27 = arith.constant 0.000000e+00 : f32
    %52 = vector.broadcast %cst_27 : f32 to vector<4x288xf32>
    %53 = arith.subf %52, %51 : vector<4x288xf32>
    %54 = math.exp %53 : vector<4x288xf32>
    %cst_28 = arith.constant 1.000000e+00 : f32
    %55 = vector.broadcast %cst_28 : f32 to vector<4x288xf32>
    %56 = arith.addf %55, %54 : vector<4x288xf32>
    %57 = tpu.reciprocal %56 : vector<4x288xf32> -> vector<4x288xf32>
    %58 = vector.extract_strided_slice %57 {offsets = [0, 0], sizes = [4, 16], strides = [1, 1]} : vector<4x288xf32> to vector<4x16xf32>
    %59 = vector.extract_strided_slice %57 {offsets = [0, 18], sizes = [4, 16], strides = [1, 1]} : vector<4x288xf32> to vector<4x16xf32>
    %60 = vector.extract_strided_slice %57 {offsets = [0, 36], sizes = [4, 16], strides = [1, 1]} : vector<4x288xf32> to vector<4x16xf32>
    %61 = vector.extract_strided_slice %57 {offsets = [0, 54], sizes = [4, 16], strides = [1, 1]} : vector<4x288xf32> to vector<4x16xf32>
    %62 = vector.extract_strided_slice %57 {offsets = [0, 72], sizes = [4, 16], strides = [1, 1]} : vector<4x288xf32> to vector<4x16xf32>
    %63 = vector.extract_strided_slice %57 {offsets = [0, 90], sizes = [4, 16], strides = [1, 1]} : vector<4x288xf32> to vector<4x16xf32>
    %64 = vector.extract_strided_slice %57 {offsets = [0, 108], sizes = [4, 16], strides = [1, 1]} : vector<4x288xf32> to vector<4x16xf32>
    %65 = vector.extract_strided_slice %57 {offsets = [0, 126], sizes = [4, 16], strides = [1, 1]} : vector<4x288xf32> to vector<4x16xf32>
    %66 = vector.extract_strided_slice %57 {offsets = [0, 144], sizes = [4, 16], strides = [1, 1]} : vector<4x288xf32> to vector<4x16xf32>
    %67 = vector.extract_strided_slice %57 {offsets = [0, 162], sizes = [4, 16], strides = [1, 1]} : vector<4x288xf32> to vector<4x16xf32>
    %68 = vector.extract_strided_slice %57 {offsets = [0, 180], sizes = [4, 16], strides = [1, 1]} : vector<4x288xf32> to vector<4x16xf32>
    %69 = vector.extract_strided_slice %57 {offsets = [0, 198], sizes = [4, 16], strides = [1, 1]} : vector<4x288xf32> to vector<4x16xf32>
    %70 = vector.extract_strided_slice %57 {offsets = [0, 216], sizes = [4, 16], strides = [1, 1]} : vector<4x288xf32> to vector<4x16xf32>
    %71 = vector.extract_strided_slice %57 {offsets = [0, 234], sizes = [4, 16], strides = [1, 1]} : vector<4x288xf32> to vector<4x16xf32>
    %72 = vector.extract_strided_slice %57 {offsets = [0, 252], sizes = [4, 16], strides = [1, 1]} : vector<4x288xf32> to vector<4x16xf32>
    %73 = vector.extract_strided_slice %57 {offsets = [0, 270], sizes = [4, 16], strides = [1, 1]} : vector<4x288xf32> to vector<4x16xf32>
    %74 = tpu.concatenate %58, %59, %60, %61, %62, %63, %64, %65, %66, %67, %68, %69, %70, %71, %72, %73 in 1 : vector<4x16xf32>, vector<4x16xf32>, vector<4x16xf32>, vector<4x16xf32>, vector<4x16xf32>, vector<4x16xf32>, vector<4x16xf32>, vector<4x16xf32>, vector<4x16xf32>, vector<4x16xf32>, vector<4x16xf32>, vector<4x16xf32>, vector<4x16xf32>, vector<4x16xf32>, vector<4x16xf32>, vector<4x16xf32> -> vector<4x256xf32>
    %c0_29 = arith.constant 0 : index
    %c0_30 = arith.constant 0 : index
    %c0_31 = arith.constant 0 : index
    %75 = vector.load %arg4[%c0_29, %c0_30, %c0_31] : memref<1x4x256xf32, #tpu.memory_space<vmem>>, vector<1x4x256xf32>
    %76 = vector.shape_cast %75 : vector<1x4x256xf32> to vector<4x256xf32>
    %77 = vector.shape_cast %74 : vector<4x256xf32> to vector<1x4x256xf32>
    tpu.vector_store %arg4[%c0_29, %c0_30, %c0_31], %77 {strides = array<i32>} : memref<1x4x256xf32, #tpu.memory_space<vmem>>, vector<1x4x256xf32>,
    return
  }
  func.func @transform_0(%arg0: i32) -> (i32, i32, i32) {
    %c0_i32 = arith.constant 0 : i32
    %c0_i32_0 = arith.constant 0 : i32
    %c0_i32_1 = arith.constant 0 : i32
    return %arg0, %c0_i32, %c0_i32_0 : i32, i32, i32
  }
  func.func @transform_1(%arg0: i32) -> (i32, i32) {
    %c0_i32 = arith.constant 0 : i32
    %c0_i32_0 = arith.constant 0 : i32
    %c0_i32_1 = arith.constant 0 : i32
    return %c0_i32, %c0_i32_0 : i32, i32
  }
  func.func @transform_2(%arg0: i32) -> (i32, i32) {
    %c0_i32 = arith.constant 0 : i32
    %c0_i32_0 = arith.constant 0 : i32
    %c0_i32_1 = arith.constant 0 : i32
    return %c0_i32, %c0_i32_0 : i32, i32
  }
  func.func @transform_3(%arg0: i32) -> (i32, i32, i32) {
    %c0_i32 = arith.constant 0 : i32
    %c0_i32_0 = arith.constant 0 : i32
    %c0_i32_1 = arith.constant 0 : i32
    return %arg0, %c0_i32, %c0_i32_0 : i32, i32, i32
  }
}

</mosaic_0001>

<bundles_post_ra>
// kernel: basic_block_sig_forward.1
= control target key start
LH: loop header
LB: loop body
LE: loop exit
PB: predicated region body
PF: predicated region fallthrough
CT: control target
= control target key end

     0   :  { %s842_s12 = smov 0   ;;  %s931_s0 = inlined_call_operand.vmem [shape: f32[2,4,256], index: 0, kind: input, shape index: {}]   ;;  %s932_s1 = inlined_call_operand.vmem [shape: f32[4,72], index: 1, kind: input, shape index: {}]   ;;  %s933_s2 = inlined_call_operand.vmem [shape: f32[4,1], index: 2, kind: input, shape index: {}]   ;;  %s934_s3 = inlined_call_operand.vmem [shape: f32[2,4,256], index: 3, kind: output, shape index: {}]  }
   0x1 LB: > { %s668_s13 = sadd.s32 4294967295, %s781_s12   ;;  %p672_p0 = scmp.ge.s32.totalorder %s781_s12, 1  ;;  %s781_s12 = sphi %s842_s12, %s13_s12  }
   0x2   : > { %p137_p1 = scmp.lt.s32.totalorder %s781_s12, 3 }
   0x4   : > { %p138_p2 = pnand %p672_p0, %p137_p1 }
   0x5   : > { %p161_p3 = scmp.lt.s32.totalorder (!%p138_p2), %s668_s13, 1  ;;  %s784_s18 = smov (!%p138_p2), 19  }
   0x6   : > { %141 = sbr.rel (%p138_p2) target bundleno = 712 (0x2c8), region = 32  ;;  %s785_s19 = smov (!%p138_p2), 31  }
   0x7   : > { %s786_s20 = smov (!%p138_p2), 33   ;;  %s787_s21 = smov (!%p138_p2), 35  }
   0x8   : > { %s788_s22 = smov (!%p138_p2), 21   ;;  %s789_s23 = smov (!%p138_p2), 37  }
   0x9   : > { %s790_s24 = smov (!%p138_p2), 23   ;;  %s791_s25 = smov (!%p138_p2), 39  }
   0xa   : > { %s792_s26 = smov (!%p138_p2), 25   ;;  %s793_s27 = smov (!%p138_p2), 41  }
   0xb   : > { %v783_v0 = vmov 0.0   ;;  %s936_s13 = smov (!%p161_p3, %s668_s13), 1  ;;  %vm173_vm0 = vcmask 572416   ;;  %s794_s28 = smov 45   ;;  %vm180_vm1 = vcmask 281752   ;;  %vm212_vm2 = vcmask 117760  }
   0xc   : > { %171 = vst [vmem:[#allocation2] sm:$0xff] %v783_v0  ;;  %172 = vst [vmem:[#allocation2 + $0x8] sm:$0xff] %v783_v0  ;;  %693 = vmatprep.subr.mxu1 %v783_v0  ;;  %439 = vmatprep.mubr.f32.mxu0 %v783_v0  ;;  %s681_s14 = sshll.u32 %s936_s13, 3  ;;  %s795_s29 = smov 27   ;;  %vm217_vm3 = vcmask 265352   ;;  %vm223_vm4 = vcmask 412952  }
   0xd   : > { %s165_s17 = scalar_lea.vmem %s931_s0, %s681_s14  ;;  %174 = vst.msk [vmem:[#allocation2 + $0x10] sm:$0xff] %vm173_vm0, %v783_v0  ;;  %s796_s30 = smov 43   ;;  %vm185_vm5 = vcmask 429352   ;;  %vm228_vm6 = vcmask 560552   ;;  %vm190_vm7 = vcmask 576952   ;;  %vm233_vm8 = vcmask 708152  }
   0xe   : > { %v175_v1 = vld [vmem:[%s165_s17] sm:$0xff]  ;;  %s797_s4 = smov 47   ;;  %s798_s5 = smov 29   ;;  %vm195_vm9 = vcmask 724552   ;;  %vm238_vm10 = vcmask 855752   ;;  %vm250_vm11 = vcmask 101376  }
   0xf   : > { %177 = vrot.lane.b32.xlu1 %v175_v1, %s784_s18  ;;  %207 = vrot.lane.b32.xlu0 %v175_v1, %s785_s19  ;;  %v219_v2 = vcombine.high %v175_v1, %v175_v1  ;;  %s799_s6 = smov 49   ;;  %vm200_vm12 = vcmask 872152   ;;  %vm243_vm13 = vcmask 1003352   ;;  %vm255_vm14 = vcmask 248952   ;;  %s800_s7 = smov 91  }
  0x10   : > { %vm248_vm15 = vcmask 1044456   ;;  %vm205_vm0 = vcmask 1019752   ;;  %s801_s8 = smov 90   ;;  %s802_s9 = smov 108   ;;  %v808_v22 = vmov 0  }
  0x11   : > { %s803_s10 = smov 92   ;;  %s804_s11 = smov 110   ;;  %761 = vset.pattern.permute.xlu0 %v808_v22  ;;  %v365_v23 = vld [vmem:[%s933_s2] sm:$0xf] }
  0x12   : > { %s805_s15 = smov 109   ;;  %s806_s16 = smov 126  }
  0x13   : > { %214 = vrot.lane.b32.xlu0 %v175_v1, %s786_s20  ;;  %220 = vrot.lane.b32.xlu1 %v219_v2, %s787_s21  ;;  %s809_s17 = smov 127  }
  0x17   : > { %182 = vrot.lane.b32.xlu0 %v175_v1, %s788_s22  ;;  %225 = vrot.lane.b32.xlu1 %v219_v2, %s789_s23  ;;  %s810_s22 = smov 100   ;;  %s811_s23 = smov 114  }
  0x1b   : > { %187 = vrot.lane.b32.xlu0 %v175_v1, %s790_s24  ;;  %230 = vrot.lane.b32.xlu1 %v219_v2, %s791_s25  ;;  %s812_s24 = smov 124   ;;  %s813_s25 = smov 122  }
  0x1f   : > { %192 = vrot.lane.b32.xlu0 %v175_v1, %s792_s26  ;;  %235 = vrot.lane.b32.xlu1 %v219_v2, %s793_s27  ;;  %s814_s26 = smov 120   ;;  %s815_s27 = smov 106  }
  0x23   : > { %245 = vrot.lane.b32.xlu0 %v219_v2, %s794_s28  ;;  %197 = vrot.lane.b32.xlu1 %v175_v1, %s795_s29  ;;  %s816_s28 = smov 118   ;;  %s817_s29 = smov 104  }
  0x27   : > { %240 = vrot.lane.b32.xlu0 %v219_v2, %s796_s30  ;;  %252 = vrot.lane.b32.xlu1 %v219_v2, %s797_s4  ;;  %s818_s30 = smov 116   ;;  %s819_s4 = smov 102  }
  0x2b   : > { %202 = vrot.lane.b32.xlu0 %v175_v1, %s798_s5  ;;  %257 = vrot.lane.b32.xlu1 %v219_v2, %s799_s6  ;;  %v364_v1 = vld [vmem:[%s932_s1] sm:$0xf]  ;;  %s820_s5 = smov 112   ;;  %s821_s6 = smov 98  }
  0x81   : > { %v178_v3 = vpop.permute.xlu1 %177  ;;  %v208_v4 = vpop.permute.xlu0 %207 }
  0x82   : > { %181 = vst.msk [vmem:[#allocation2] sm:$0xf] %vm180_vm1, %v178_v3  ;;  %vm260_vm1 = vcmask 396552  }
  0x83   : > { %213 = vst.msk [vmem:[#allocation2 + $0x8] sm:$0xf] %vm212_vm2, %v208_v4  ;;  %vm210_vm2 = vcmask 1044472  }
  0x85   : > { %v215_v5 = vpop.permute.xlu0 %214  ;;  %v221_v6 = vpop.permute.xlu1 %220 }
  0x86   : > { %218 = vst.msk [vmem:[#allocation2 + $0x8] sm:$0xf] %vm217_vm3, %v215_v5  ;;  %vm807_vm3 = vmmov 0  }
  0x87   : > { %224 = vst.msk [vmem:[#allocation2 + $0x8] sm:$0xf] %vm223_vm4, %v221_v6  ;;  %711 = vmatprep.mubr.msk.f32.mxu1 %vm807_vm3, %v783_v0  ;;  %vm358_vm4 = vcmask 736256   ;;  %vm597_vm3 = vcmask 785408  }
  0x89   : > { %v183_v7 = vpop.permute.xlu0 %182  ;;  %v226_v8 = vpop.permute.xlu1 %225 }
  0x8a   : > { %186 = vst.msk [vmem:[#allocation2] sm:$0xf] %vm185_vm5, %v183_v7  ;;  %vm346_vm5 = vcmask 744448  }
  0x8b   : > { %229 = vst.msk [vmem:[#allocation2 + $0x8] sm:$0xf] %vm228_vm6, %v226_v8  ;;  %vm334_vm6 = vcmask 752640  }
  0x8d   : > { %v188_v9 = vpop.permute.xlu0 %187  ;;  %v231_v10 = vpop.permute.xlu1 %230 }
  0x8e   : > { %191 = vst.msk [vmem:[#allocation2] sm:$0xf] %vm190_vm7, %v188_v9  ;;  %vm322_vm7 = vcmask 883712  }
  0x8f   : > { %234 = vst.msk [vmem:[#allocation2 + $0x8] sm:$0xf] %vm233_vm8, %v231_v10  ;;  %vm310_vm8 = vcmask 891904  }
  0x91   : > { %v193_v11 = vpop.permute.xlu0 %192  ;;  %v236_v12 = vpop.permute.xlu1 %235 }
  0x92   : > { %196 = vst.msk [vmem:[#allocation2] sm:$0xf] %vm195_vm9, %v193_v11  ;;  %vm298_vm9 = vcmask 900096  }
  0x93   : > { %239 = vst.msk [vmem:[#allocation2 + $0x8] sm:$0xf] %vm238_vm10, %v236_v12  ;;  %vm286_vm10 = vcmask 1031168  }
  0x95   : > { %v246_v13 = vpop.permute.xlu0 %245  ;;  %v198_v14 = vpop.permute.xlu1 %197 }
  0x96   : > { %251 = vst.msk [vmem:[#allocation2 + $0x10] sm:$0xf] %vm250_vm11, %v246_v13  ;;  %vm274_vm11 = vcmask 1039360  }
  0x97   : > { %201 = vst.msk [vmem:[#allocation2] sm:$0xf] %vm200_vm12, %v198_v14  ;;  %vm371_vm12 = vcmask 588800  }
  0x99   : > { %v241_v15 = vpop.permute.xlu0 %240  ;;  %v253_v16 = vpop.permute.xlu1 %252 }
  0x9a   : > { %244 = vst.msk [vmem:[#allocation2 + $0x8] sm:$0xf] %vm243_vm13, %v241_v15  ;;  %vm587_vm13 = vcmask 130048  }
  0x9b   : > { %256 = vst.msk [vmem:[#allocation2 + $0x10] sm:$0xf] %vm255_vm14, %v253_v16  ;;  %vm589_vm14 = vcmask 261120  }
  0x9c   : > { %249 = vst.msk [vmem:[#allocation2 + $0x8] sm:$0xf] %vm248_vm15, %v246_v13  ;;  %vm591_vm15 = vcmask 392192  }
  0x9d   : > { %v203_v17 = vpop.permute.xlu0 %202  ;;  %v258_v18 = vpop.permute.xlu1 %257 }
  0x9e   : > { %206 = vst.msk [vmem:[#allocation2] sm:$0xf] %vm205_vm0, %v203_v17  ;;  %vm581_vm0 = vcmask 818176  }
  0x9f   : > { %261 = vst.msk [vmem:[#allocation2 + $0x10] sm:$0xf] %vm260_vm1, %v258_v18  ;;  %vm593_vm1 = vcmask 523264  }
  0xa0   : > { %211 = vst.msk [vmem:[#allocation2] sm:$0xf] %vm210_vm2, %v208_v4  ;;  %vm595_vm2 = vcmask 654336  }
  0xa3   : > { %v887_v21 = vld [vmem:[#allocation2 + $0x8] sm:$0xff] }
  0xa6   : > { %v863_v19 = vld [vmem:[#allocation2 + $0x10] sm:$0xff] }
  0xa7   : > { %344 = vrot.lane.b32.xlu0 %v863_v19, %s800_s7  ;;  %356 = vrot.lane.b32.xlu1 %v863_v19, %s801_s8  ;;  %v873_v20 = vld [vmem:[#allocation2] sm:$0xff] }
  0xab   : > { %320 = vrot.lane.b32.xlu0 %v863_v19, %s802_s9  ;;  %332 = vrot.lane.b32.xlu1 %v863_v19, %s803_s10 }
  0xaf   : > { %296 = vrot.lane.b32.xlu0 %v863_v19, %s804_s11  ;;  %308 = vrot.lane.b32.xlu1 %v863_v19, %s805_s15 }
  0xb3   : > { %352 = vrot.lane.b32.xlu0 %v873_v20, %s801_s8  ;;  %284 = vrot.lane.b32.xlu1 %v863_v19, %s806_s16 }
  0xb7   : > { %328 = vrot.lane.b32.xlu0 %v873_v20, %s803_s10  ;;  %340 = vrot.lane.b32.xlu1 %v873_v20, %s800_s7 }
  0xbb   : > { %304 = vrot.lane.b32.xlu0 %v873_v20, %s805_s15  ;;  %316 = vrot.lane.b32.xlu1 %v873_v20, %s802_s9 }
  0xbf   : > { %280 = vrot.lane.b32.xlu0 %v873_v20, %s806_s16  ;;  %292 = vrot.lane.b32.xlu1 %v873_v20, %s804_s11 }
  0xc3   : > { %354 = vrot.lane.b32.xlu0 %v887_v21, %s801_s8  ;;  %342 = vrot.lane.b32.xlu1 %v887_v21, %s800_s7 }
  0xc7   : > { %330 = vrot.lane.b32.xlu0 %v887_v21, %s803_s10  ;;  %318 = vrot.lane.b32.xlu1 %v887_v21, %s802_s9 }
  0xcb   : > { %306 = vrot.lane.b32.xlu0 %v887_v21, %s805_s15  ;;  %294 = vrot.lane.b32.xlu1 %v887_v21, %s804_s11 }
  0xcf   : > { %282 = vrot.lane.b32.xlu0 %v887_v21, %s806_s16  ;;  %270 = vrot.lane.b32.xlu1 %v887_v21, %s809_s17 }
  0xd3   : > { %272 = vrot.lane.b32.xlu0 %v863_v19, %s809_s17  ;;  %268 = vrot.lane.b32.xlu1 %v873_v20, %s809_s17 }
  0xd7   : > { %368 = vperm.xlu0 %761, %v365_v23  }
 0x119   : > { %v345_v24 = vpop.permute.xlu0 %344  ;;  %v357_v25 = vpop.permute.xlu1 %356 }
 0x11a   : > { %694 = vmatpush3.msra.mxu1 %v357_v25 }
 0x11b   : > { %695 = vmatprep.subr.mxu1 %v783_v0 }
 0x11c   : > { %696 = vmatpush3.msra.mxu1 %v345_v24 }
 0x11d   : > { %v321_v26 = vpop.permute.xlu0 %320  ;;  %697 = vmatprep.subr.mxu1 %v783_v0  ;;  %v333_v27 = vpop.permute.xlu1 %332 }
 0x11e   : > { %698 = vmatpush3.msra.mxu1 %v333_v27 }
 0x11f   : > { %699 = vmatprep.subr.mxu1 %v783_v0 }
 0x120   : > { %700 = vmatpush3.msra.mxu1 %v321_v26 }
 0x121   : > { %v297_v28 = vpop.permute.xlu0 %296  ;;  %701 = vmatprep.subr.mxu1 %v783_v0  ;;  %v309_v29 = vpop.permute.xlu1 %308 }
 0x122   : > { %702 = vmatpush3.msra.mxu1 %v309_v29 }
 0x123   : > { %703 = vmatprep.subr.mxu1 %v783_v0 }
 0x124   : > { %704 = vmatpush3.msra.mxu1 %v297_v28 }
 0x125   : > { %v353_v30 = vpop.permute.xlu0 %352  ;;  %705 = vmatprep.subr.mxu1 %v783_v0  ;;  %v285_v31 = vpop.permute.xlu1 %284 }
 0x126   : > { %706 = vmatpush3.msra.mxu1 %v285_v31 }
 0x127   : > { %707 = vmatprep.subr.mxu1 %v783_v0 }
 0x129   : > { %v329_v32 = vpop.permute.xlu0 %328  ;;  %v341_v33 = vpop.permute.xlu1 %340 }
 0x12d   : > { %v305_v34 = vpop.permute.xlu0 %304  ;;  %v317_v35 = vpop.permute.xlu1 %316 }
 0x131   : > { %v281_v36 = vpop.permute.xlu0 %280  ;;  %v293_v37 = vpop.permute.xlu1 %292 }
 0x135   : > { %v355_v38 = vpop.permute.xlu0 %354  ;;  %v343_v39 = vpop.permute.xlu1 %342 }
 0x136   : > { %v360_v40 = vsel %vm358_vm4, %v355_v38, %v357_v25  ;;  %v359_v41 = vsel %vm358_vm4, %v353_v30, %v355_v38  ;;  %v348_v42 = vsel %vm346_vm5, %v343_v39, %v345_v24  ;;  %v347_v45 = vsel %vm346_vm5, %v341_v33, %v343_v39 }
 0x137   : > { %389 = vmatprep.subr.mxu0 %v360_v40  ;;  %vm555_vm4 = vcmask 932864   ;;  %vm599_vm5 = vcmask 916480  }
 0x138   : > { %390 = vmatpush1.msra.mxu0 %v359_v41 }
 0x139   : > { %v331_v43 = vpop.permute.xlu0 %330  ;;  %391 = vmatprep.subr.mxu0 %v348_v42  ;;  %v319_v44 = vpop.permute.xlu1 %318 }
 0x13a   : > { %392 = vmatpush1.msra.mxu0 %v347_v45  ;;  %v336_v46 = vsel %vm334_vm6, %v331_v43, %v333_v27  ;;  %v335_v47 = vsel %vm334_vm6, %v329_v32, %v331_v43  ;;  %v324_v48 = vsel %vm322_vm7, %v319_v44, %v321_v26  ;;  %v323_v51 = vsel %vm322_vm7, %v317_v35, %v319_v44 }
 0x13b   : > { %393 = vmatprep.subr.mxu0 %v336_v46 }
 0x13c   : > { %394 = vmatpush1.msra.mxu0 %v335_v47 }
 0x13d   : > { %v307_v49 = vpop.permute.xlu0 %306  ;;  %395 = vmatprep.subr.mxu0 %v324_v48  ;;  %v295_v50 = vpop.permute.xlu1 %294 }
 0x13e   : > { %396 = vmatpush1.msra.mxu0 %v323_v51  ;;  %v312_v52 = vsel %vm310_vm8, %v307_v49, %v309_v29  ;;  %v311_v53 = vsel %vm310_vm8, %v305_v34, %v307_v49  ;;  %v300_v54 = vsel %vm298_vm9, %v295_v50, %v297_v28  ;;  %v299_v57 = vsel %vm298_vm9, %v293_v37, %v295_v50 }
 0x13f   : > { %397 = vmatprep.subr.mxu0 %v312_v52 }
 0x140   : > { %398 = vmatpush1.msra.mxu0 %v311_v53 }
 0x141   : > { %v283_v55 = vpop.permute.xlu0 %282  ;;  %399 = vmatprep.subr.mxu0 %v300_v54  ;;  %v271_v56 = vpop.permute.xlu1 %270 }
 0x142   : > { %400 = vmatpush1.msra.mxu0 %v299_v57  ;;  %v288_v58 = vsel %vm286_vm10, %v283_v55, %v285_v31  ;;  %v287_v59 = vsel %vm286_vm10, %v281_v36, %v283_v55 }
 0x143   : > { %401 = vmatprep.subr.mxu0 %v288_v58 }
 0x144   : > { %402 = vmatpush1.msra.mxu0 %v287_v59 }
 0x145   : > { %v273_v60 = vpop.permute.xlu0 %272  ;;  %v269_v61 = vpop.permute.xlu1 %268 }
 0x146   : > { %708 = vmatpush3.msra.mxu1 %v273_v60  ;;  %v276_v62 = vsel %vm274_vm11, %v271_v56, %v273_v60  ;;  %v275_v63 = vsel %vm274_vm11, %v269_v61, %v271_v56 }
 0x147   : > { %403 = vmatprep.subr.mxu0 %v276_v62  ;;  %709 = vmatprep.subr.mxu1 %v783_v0 }
 0x148   : > { %404 = vmatpush1.msra.mxu0 %v275_v63  ;;  %710 = vmatpush3.msra.mxu1 %v863_v19 }
 0x149   : > { %405 = vmatprep.subr.mxu0 %v887_v21  ;;  %712 = vmatmul.mubr.msk.f32.vlgmr.msra.gmra.mxu1 %vm371_vm12, %v364_v1 }
 0x14a   : > { %406 = vmatpush1.msra.mxu0 %v873_v20 }
 0x14b   : > { %677 = vmatmul.mubr.msk.f32.vlgmr.msra.gmra.mxu0 %vm371_vm12, %v364_v1 }
 0x152   : > { %v369_v2 = vpop.permute.xlu0 %368 }
 0x209   : > { %v512_v3 = vpop.f32.mrf.mxu1 }
 0x20a   : > { %v513_v4 = vadd.f32 %v512_v3, %v369_v2 }
 0x20b   : > { %v441_v5 = vpop.f32.mrf.mxu0  ;;  %v713_v6 = vpop.f32.mrf.mxu1 }
 0x20c   : > { %v518_v7 = vsub.f32 0.0, %v513_v4  ;;  %v442_v8 = vadd.f32 %v441_v5, %v369_v2 }
 0x20d   : > { %v443_v9 = vpop.f32.mrf.mxu0 }
 0x20e   : > { %v523_v10 = vmul.f32 1.442695, %v518_v7  ;;  %v516_v11 = vsub.f32 0.0, %v442_v8  ;;  %v444_v0 = vadd.f32 %v443_v9, %v369_v2 }
 0x210   : > { %763 = vpow2.f32 %v523_v10  ;;  %v519_v12 = vmul.f32 1.442695, %v516_v11  ;;  %v517_v13 = vsub.f32 0.0, %v444_v0 }
 0x212   : > { %765 = vpow2.f32 %v519_v12  ;;  %v521_v14 = vmul.f32 1.442695, %v517_v13 }
 0x214   : > { %767 = vpow2.f32 %v521_v14 }
 0x21d   : > { %v764_v15 = vpop.eup %763 }
 0x21e   : > { %v527_v16 = vadd.f32 1.0, %v764_v15 }
 0x21f   : > { %v766_v17 = vpop.eup %765 }
 0x220   : > { %769 = vrcp.f32 %v527_v16  ;;  %v525_v18 = vadd.f32 1.0, %v766_v17 }
 0x221   : > { %v768_v19 = vpop.eup %767 }
 0x222   : > { %771 = vrcp.f32 %v525_v18  ;;  %v526_v20 = vadd.f32 1.0, %v768_v19 }
 0x224   : > { %773 = vrcp.f32 %v526_v20 }
 0x22d   : > { %v770_v21 = vpop.eup %769 }
 0x22e   : > { %579 = vrot.lane.b32.xlu0 %v770_v21, %s810_s22 }
 0x22f   : > { %v772_v22 = vpop.eup %771 }
 0x230   : > { %532 = vrot.lane.b32.xlu1 %v772_v22, %s806_s16 }
 0x231   : > { %v774_v23 = vpop.eup %773 }
 0x232   : > { %551 = vrot.lane.b32.xlu0 %v772_v22, %s811_s23 }
 0x234   : > { %535 = vrot.lane.b32.xlu1 %v772_v22, %s812_s24 }
 0x236   : > { %561 = vrot.lane.b32.xlu0 %v774_v23, %s804_s11 }
 0x238   : > { %538 = vrot.lane.b32.xlu1 %v772_v22, %s813_s25 }
 0x23a   : > { %564 = vrot.lane.b32.xlu0 %v774_v23, %s802_s9  ;;  %s170_s9 = scalar_lea.vmem %s934_s3, %s681_s14 }
 0x23c   : > { %541 = vrot.lane.b32.xlu1 %v772_v22, %s814_s26 }
 0x23e   : > { %567 = vrot.lane.b32.xlu0 %v774_v23, %s815_s27 }
 0x240   : > { %544 = vrot.lane.b32.xlu1 %v772_v22, %s816_s28 }
 0x242   : > { %570 = vrot.lane.b32.xlu0 %v774_v23, %s817_s29 }
 0x244   : > { %547 = vrot.lane.b32.xlu1 %v772_v22, %s818_s30 }
 0x246   : > { %573 = vrot.lane.b32.xlu0 %v774_v23, %s819_s4 }
 0x248   : > { %558 = vrot.lane.b32.xlu1 %v774_v23, %s820_s5 }
 0x24a   : > { %584 = vrot.lane.b32.xlu0 %v770_v21, %s821_s6 }
 0x24c   : > { %577 = vrot.lane.b32.xlu1 %v774_v23, %s810_s22 }
 0x250   : > { %553 = vrot.lane.b32.xlu1 %v774_v23, %s811_s23 }
 0x2a0   : > { %v580_v24 = vpop.permute.xlu0 %579 }
 0x2a2   : > { %v533_v25 = vpop.permute.xlu1 %532 }
 0x2a3   : > { %v588_v41 = vsel %vm587_vm13, %v772_v22, %v533_v25 }
 0x2a4   : > { %v552_v26 = vpop.permute.xlu0 %551 }
 0x2a6   : > { %v536_v27 = vpop.permute.xlu1 %535 }
 0x2a7   : > { %v590_v44 = vsel %vm589_vm14, %v588_v41, %v536_v27 }
 0x2a8   : > { %v562_v28 = vpop.permute.xlu0 %561 }
 0x2aa   : > { %v539_v29 = vpop.permute.xlu1 %538 }
 0x2ab   : > { %v592_v47 = vsel %vm591_vm15, %v590_v44, %v539_v29 }
 0x2ac   : > { %v565_v30 = vpop.permute.xlu0 %564 }
 0x2ae   : > { %v542_v31 = vpop.permute.xlu1 %541 }
 0x2af   : > { %v594_v48 = vsel %vm593_vm1, %v592_v47, %v542_v31 }
 0x2b0   : > { %v568_v32 = vpop.permute.xlu0 %567 }
 0x2b2   : > { %v545_v33 = vpop.permute.xlu1 %544 }
 0x2b3   : > { %v596_v50 = vsel %vm595_vm2, %v594_v48, %v545_v33 }
 0x2b4   : > { %v571_v35 = vpop.permute.xlu0 %570 }
 0x2b6   : > { %v548_v34 = vpop.permute.xlu1 %547 }
 0x2b7   : > { %v598_v52 = vsel %vm597_vm3, %v596_v50, %v548_v34 }
 0x2b8   : > { %v574_v39 = vpop.permute.xlu0 %573 }
 0x2ba   : > { %v559_v36 = vpop.permute.xlu1 %558 }
 0x2bb   : > { %v601_v37 = vsel %vm587_vm13, %v559_v36, %v562_v28 }
 0x2bc   : > { %v602_v38 = vsel %vm589_vm14, %v601_v37, %v565_v30  ;;  %v585_v53 = vpop.permute.xlu0 %584 }
 0x2bd   : > { %v603_v40 = vsel %vm591_vm15, %v602_v38, %v568_v32 }
 0x2be   : > { %v604_v42 = vsel %vm593_vm1, %v603_v40, %v571_v35  ;;  %v578_v43 = vpop.permute.xlu1 %577 }
 0x2bf   : > { %v605_v45 = vsel %vm595_vm2, %v604_v42, %v574_v39  ;;  %v582_v46 = vsel %vm581_vm0, %v578_v43, %v580_v24 }
 0x2c0   : > { %v606_v49 = vsel %vm597_vm3, %v605_v45, %v582_v46 }
 0x2c1   : > { %v607_v55 = vsel %vm599_vm5, %v606_v49, %v585_v53 }
 0x2c2   : > { %v554_v51 = vpop.permute.xlu1 %553 }
 0x2c3   : > { %v556_v54 = vsel %vm555_vm4, %v552_v26, %v554_v51 }
 0x2c4   : > { %v600_v56 = vsel %vm599_vm5, %v598_v52, %v556_v54 }
 0x2c5   : > { %v610_v57 = vcombine.low %v600_v56, %v607_v55 }
 0x2c7   : > { %612 = vst [vmem:[%s170_s9] sm:$0xff] %v610_v57 }
 0x2c8 PF: > { %s13_s12 = sadd.s32 1, %s781_s12  }
 0x2c9   : > { %p10_p4 = scmp.ge.s32.totalorder %s13_s12, 4  }
 0x2cb   :  { %12 = sbr.rel (!%p10_p4) target bundleno = 1 (0x1), region = 62 }

</bundles_post_ra>
